<compile_context>
chip_gen: v7x
topology: tpu7x:2x2x1
jax: 0.10.0
libtpu: 0.0.40
codegen_flags: <defaults>
</compile_context>

<pallas_src>
import functools

import numpy as np
import jax
import jax.numpy as jnp
from jax.experimental import pallas as pl
from jax.experimental.pallas import tpu as pltpu


def _round_up(x, m):
    return -(-x // m) * m


def _sublane_tile(dtype):
    # 8 sublanes for 32-bit, 16 for bf16, 32 for 8-bit types.
    return max(8, 32 // jnp.dtype(dtype).itemsize)


def _padded_block_bytes(shape, dtype):
    """VMEM bytes of a block after (sublane, lane) layout padding of the last 2 dims."""
    itemsize = jnp.dtype(dtype).itemsize
    dims = list(shape)
    if len(dims) >= 2:
        dims[-1] = _round_up(dims[-1], 128)
        dims[-2] = _round_up(dims[-2], _sublane_tile(dtype))
    elif len(dims) == 1:
        dims[-1] = _round_up(dims[-1], 128)
    n = 1
    for d in dims:
        n *= int(d)
    return n * itemsize


def _inner_pack_kernel(x_ref, o_ref, *, F, P, P_pad):
    """x_ref: (tb, F, D) -> o_ref: (tb, P_pad) packed i<j inner products."""
    xb = x_ref[...]
    # Per-sample Gram matrices on the MXU, f32 accumulation.
    g = jnp.einsum("bfd,bgd->bfg", xb, xb, preferred_element_type=jnp.float32)
    tb = o_ref.shape[0]
    # Define the pad lanes [P, P_pad) so the lane-dense writeback is clean.
    if P_pad > P:
        o_ref[:, pl.ds(P, P_pad - P)] = jnp.zeros((tb, P_pad - P), dtype=o_ref.dtype)
    # Pack the upper-triangular (i < j) entries, row by row (static unroll,
    # F-1 small stores into VMEM; HBM writeback is one lane-dense block).
    off = 0
    for i in range(F - 1):
        n = F - 1 - i
        o_ref[:, pl.ds(off, n)] = g[:, i, i + 1:].astype(o_ref.dtype)
        off += n


def _pick_batch_tile(B, F, D, in_dtype, out_dtype, P_pad,
                     vmem_budget_bytes=24 * 1024 * 1024):
    """Largest sublane-aligned batch tile whose padded, double-buffered VMEM fits."""
    align = _sublane_tile(out_dtype)
    in_itemsize = jnp.dtype(in_dtype).itemsize
    out_itemsize = jnp.dtype(out_dtype).itemsize
    # Padded per-batch-row VMEM cost (tb is a multiple of `align`, so the tb
    # dim itself adds no extra sublane padding).
    in_row = _round_up(F, _sublane_tile(in_dtype)) * _round_up(D, 128) * in_itemsize
    out_row = P_pad * out_itemsize                       # P_pad already 128-aligned
    gram_row = _round_up(F, 8) * _round_up(F, 128) * 4   # f32 Gram temp
    per_row = 3 * in_row + 2 * out_row + gram_row        # 2 in bufs + live value, 2 out bufs
    tb = max(align, int(vmem_budget_bytes // per_row))
    tb = (tb // align) * align
    # Give the megacore/parallel grid >=4 steps when the batch is large enough.
    min_steps = 4
    if B >= min_steps * 32 * align:
        tb = min(tb, _round_up(-(-B // min_steps), align))
    if tb >= B:
        tb = B  # single tile covering the whole (unpadded) batch
    return int(tb), int(per_row)


def inner_forward(x, *, batch_tile=None, cast_to_bf16=False):
    """x: (B, F, D) -> (B, F*(F-1)/2) pairwise inner products <x_i, x_j>, i<j.

    If cast_to_bf16=True, inputs are cast to bf16 before the kernel (halves HBM
    read bytes) and the result is returned in bf16; accumulation stays f32.
    """
    B, F, D = x.shape
    P = F * (F - 1) // 2
    if P == 0:
        return jnp.zeros((B, 0), dtype=x.dtype)

    if cast_to_bf16 and x.dtype == jnp.float32:
        x = x.astype(jnp.bfloat16)
    out_dtype = x.dtype
    P_pad = _round_up(P, 128)  # lane-dense packed output width

    tb, per_row = _pick_batch_tile(B, F, D, x.dtype, out_dtype, P_pad)
    if batch_tile is not None:
        tb = int(min(batch_tile, B))

    b_pad = _round_up(B, tb)
    if b_pad != B:
        x = jnp.pad(x, ((0, b_pad - B), (0, 0), (0, 0)))

    # vmem_limit derived from the actual padded block bytes + Mosaic headroom.
    tile_bytes = per_row * _round_up(tb, _sublane_tile(out_dtype))
    vmem_limit = int(max(tile_bytes + (8 << 20), 16 << 20))

    kernel = functools.partial(_inner_pack_kernel, F=F, P=P, P_pad=P_pad)
    packed = pl.pallas_call(
        kernel,
        out_shape=jax.ShapeDtypeStruct((b_pad, P_pad), out_dtype),
        grid_spec=pltpu.PrefetchScalarGridSpec(
            num_scalar_prefetch=0,
            grid=(b_pad // tb,),
            in_specs=[pl.BlockSpec((tb, F, D), lambda b: (b, 0, 0))],
            out_specs=pl.BlockSpec((tb, P_pad), lambda b: (b, 0)),
        ),
        compiler_params=pltpu.CompilerParams(
            dimension_semantics=("parallel",),
            vmem_limit_bytes=vmem_limit,
        ),
    )(x)

    return packed[:B, :P]


def inner_forward_ref(x):
    """Pure-JAX reference matching the PyTorch `Inner` module."""
    B, F, D = x.shape
    row, col = np.triu_indices(F, k=1)
    return jnp.sum(x[:, row, :] * x[:, col, :], axis=2)


if __name__ == "__main__":
    key = jax.random.PRNGKey(0)
    B, F, D = 2, 4, 32  # batch, num_fields, embed_dim (small test shapes)
    x = jax.random.normal(key, (B, F, D), dtype=jnp.float32)

    out = jax.block_until_ready(inner_forward(x))
    ref = inner_forward_ref(x)

    assert out.shape == (B, F * (F - 1) // 2)
    assert out.dtype == x.dtype
    np.testing.assert_allclose(np.asarray(out), np.asarray(ref), rtol=1e-5, atol=1e-5)

    print("KERNEL_OK")
</pallas_src>

<mosaic_0001>
module attributes {stable_mosaic.version = 11 : i64} {
  func.func @_inner_pack_kernel(%arg0: i32, %arg1: memref<2x4x32xf32, #tpu.memory_space<vmem>>, %arg2: memref<2x128xf32, #tpu.memory_space<vmem>>) attributes {dimension_semantics = [#tpu.dimension_semantics<parallel>], iteration_bounds = array<i64: 1>, scalar_prefetch = 0 : i64, scratch_operands = 0 : i64, tpu.core_type = #tpu.core_type<tc>, window_params = [{transform_indices = @transform_0, window_bounds = array<i64: 2, 4, 32>}, {transform_indices = @transform_1, window_bounds = array<i64: 2, 128>}]} {
    %c0 = arith.constant 0 : index
    %c0_0 = arith.constant 0 : index
    %c0_1 = arith.constant 0 : index
    %0 = vector.load %arg1[%c0, %c0_0, %c0_1] : memref<2x4x32xf32, #tpu.memory_space<vmem>>, vector<2x4x32xf32>
    "tpu.trace_start"() <{level = 10 : i32, message = "bfd,bgd->bfg"}> : () -> ()
    %cst = arith.constant dense<0.000000e+00> : vector<2x4x4xf32>
    %1 = tpu.matmul %0, %0, %cst {dimension_numbers = #tpu.dot_dimension_numbers<[2], [2], [1], [1], [0, 0, 0, 1, 1, 1], [0], [0]>} : vector<2x4x32xf32>, vector<2x4x32xf32>, vector<2x4x4xf32> -> vector<2x4x4xf32>
    %cst_2 = arith.constant 0.000000e+00 : f32
    "tpu.trace_stop"() : () -> ()
    %2 = vector.broadcast %cst_2 : f32 to vector<2x122xf32>
    %c0_3 = arith.constant 0 : index
    %c6 = arith.constant 6 : index
    %3 = vector.load %arg2[%c0_3, %c6] : memref<2x128xf32, #tpu.memory_space<vmem>>, vector<2x122xf32>
    tpu.vector_store %arg2[%c0_3, %c6], %2 {strides = array<i32>} : memref<2x128xf32, #tpu.memory_space<vmem>>, vector<2x122xf32>,
    %4 = vector.extract_strided_slice %1 {offsets = [0, 0, 1], sizes = [2, 1, 3], strides = [1, 1, 1]} : vector<2x4x4xf32> to vector<2x1x3xf32>
    %5 = vector.shape_cast %4 : vector<2x1x3xf32> to vector<2x3xf32>
    %c0_4 = arith.constant 0 : index
    %c0_5 = arith.constant 0 : index
    %6 = vector.load %arg2[%c0_4, %c0_5] : memref<2x128xf32, #tpu.memory_space<vmem>>, vector<2x3xf32>
    tpu.vector_store %arg2[%c0_4, %c0_5], %5 {strides = array<i32>} : memref<2x128xf32, #tpu.memory_space<vmem>>, vector<2x3xf32>,
    %7 = vector.extract_strided_slice %1 {offsets = [0, 1, 2], sizes = [2, 1, 2], strides = [1, 1, 1]} : vector<2x4x4xf32> to vector<2x1x2xf32>
    %8 = vector.shape_cast %7 : vector<2x1x2xf32> to vector<2x2xf32>
    %c0_6 = arith.constant 0 : index
    %c3 = arith.constant 3 : index
    %9 = vector.load %arg2[%c0_6, %c3] : memref<2x128xf32, #tpu.memory_space<vmem>>, vector<2x2xf32>
    tpu.vector_store %arg2[%c0_6, %c3], %8 {strides = array<i32>} : memref<2x128xf32, #tpu.memory_space<vmem>>, vector<2x2xf32>,
    %10 = vector.extract_strided_slice %1 {offsets = [0, 2, 3], sizes = [2, 1, 1], strides = [1, 1, 1]} : vector<2x4x4xf32> to vector<2x1x1xf32>
    %11 = vector.shape_cast %10 : vector<2x1x1xf32> to vector<2x1xf32>
    %c0_7 = arith.constant 0 : index
    %c5 = arith.constant 5 : index
    %12 = vector.load %arg2[%c0_7, %c5] : memref<2x128xf32, #tpu.memory_space<vmem>>, vector<2x1xf32>
    tpu.vector_store %arg2[%c0_7, %c5], %11 {strides = array<i32>} : memref<2x128xf32, #tpu.memory_space<vmem>>, vector<2x1xf32>,
    return
  }
  func.func @transform_0(%arg0: i32) -> (i32, i32, i32) {
    %c0_i32 = arith.constant 0 : i32
    %c0_i32_0 = arith.constant 0 : i32
    %c0_i32_1 = arith.constant 0 : i32
    return %arg0, %c0_i32, %c0_i32_0 : i32, i32, i32
  }
  func.func @transform_1(%arg0: i32) -> (i32, i32) {
    %c0_i32 = arith.constant 0 : i32
    %c0_i32_0 = arith.constant 0 : i32
    return %arg0, %c0_i32 : i32, i32
  }
}

</mosaic_0001>

<bundles_post_ra>
// kernel: tpu_custom_call.1
= control target key start
LH: loop header
LB: loop body
LE: loop exit
PB: predicated region body
PF: predicated region fallthrough
CT: control target
= control target key end

     0   :  { %6 = vsyncpa [#allocation3], 0  ;;  %s331_s0 = inlined_call_operand.hbm [shape: f32[2,4,32], index: 0, kind: input, shape index: {}]   ;;  %s332_s1 = inlined_call_operand.hbm [shape: f32[2,128], index: 1, kind: output, shape index: {}]  }
   0x1   :  { %7 = vsyncpa [#allocation4], 0  ;;  %s288_s6 = smov [#allocation2]   ;;  %s240_s10 = scalar_lea.hbm %s331_s0, 128 }
   0x2   :  { %s13_s7 = sshll.u32 %s288_s6, 4  ;;  %p241_p0 = scmp.ne.s32.totalorder %s331_s0, %s240_s10  ;;  %s14_s7 = int_to_ptr.vmem [resolvable:$true] %s13_s7 }
   0x3   :  { %p244_p1 = scmp.lt.u32.totalorder %s240_s10, %s331_s0 }
   0x5   :  { %p246_p2 = pnand %p244_p1, %p241_p0 }
   0x7   :  { %249 = shalt.err (!%p246_p2)
}
   0x8   :  { %s250_s15 = scalar_lea.vmem %s14_s7, 128  ;;  %p255_p4 = scmp.lt.s32.totalorder %s14_s7, %s14_s7 }
   0x9   :  { %p251_p3 = scmp.ne.s32.totalorder %s14_s7, %s250_s15  ;;  %p256_p5 = scmp.lt.s32.totalorder %s250_s15, %s250_s15 }
   0xb   :  { %p257_p6 = por %p256_p5, %p255_p4 }
   0xd   :  { %p258_p7 = pnand %p257_p6, %p251_p3 }
   0xf   :  { %261 = shalt.err (!%p258_p7)
}
  0x10   :  { %s289_s16 = smov 64   ;;  %s290_s17 = smov 4  }
  0x11   :  { %19 = dma.hbm_to_vmem [thread:$0]  %s331_s0, 128, %s14_s7, [#allocation3], %s289_s16, %s289_s16, %s290_s17  }
  0x12   :  { %284 = dma.done.wait [#allocation3], 128  }
  0x13   :  { %285 = vsyncadd [#allocation3], 4294967168  ;;  %v291_v0 = vmov 0.0   ;;  %vm292_vm0 = vmmov 0   ;;  %vm25_vm1 = vcmask 261120   ;;  %vm172_vm2 = vcmask 1041456  }
  0x14   :  { %226 = vmatprep.subr.mxu1 %v291_v0  ;;  %221 = vmatprep.subr.mxu0 %v291_v0  ;;  %v24_v1 = vld [vmem:[#allocation2 + $0x4] sm:$0xf]  ;;  %v23_v2 = vld [vmem:[#allocation2] sm:$0xf]  ;;  %173 = vst.msk [vmem:[#allocation5] sm:$0x3] %vm172_vm2, %v291_v0 }
  0x15   :  { %228 = vmatprep.mubr.msk.f32.mxu1 %vm292_vm0, %v291_v0  ;;  %223 = vmatprep.mubr.msk.f32.mxu0 %vm292_vm0, %v291_v0  ;;  %vm191_vm3 = vcmask 1043459   ;;  %vm177_vm4 = vcmask 1041409   ;;  %vm184_vm5 = vcmask 1042434   ;;  %s293_s0 = smov 2   ;;  %s294_s20 = smov 127   ;;  %vm182_vm6 = vcmask 17408  }
  0x16   :  { %227 = vmatpush3.xpose.msk.msra.mxu1 %vm25_vm1, %v24_v1  ;;  %222 = vmatpush3.xpose.msk.msra.mxu0 %vm25_vm1, %v23_v2  ;;  %s295_s21 = smov 1   ;;  %s296_s22 = smov [#allocation5]   ;;  %vm189_vm7 = vcmask 34841   ;;  %vm196_vm8 = vcmask 44074  }
  0x17   :  { %s204_s23 = sshll.u32 %s296_s22, 4  ;;  %s205_s23 = int_to_ptr.vmem [resolvable:$true] %s204_s23 }
  0x18   :  { %s262_s24 = scalar_lea.vmem %s205_s23, 32  ;;  %p267_p9 = scmp.lt.s32.totalorder %s205_s23, %s205_s23 }
  0x19   :  { %229 = vmatmul.mubr.msk.f32.vlgmr.msra.gmra.mrb[0].mxu1 %vm25_vm1, %v24_v1  ;;  %224 = vmatmul.mubr.msk.f32.vlgmr.msra.gmra.mrb[0].mxu0 %vm25_vm1, %v23_v2  ;;  %p263_p8 = scmp.ne.s32.totalorder %s205_s23, %s262_s24  ;;  %p268_p10 = scmp.lt.s32.totalorder %s262_s24, %s262_s24 }
  0x1b   :  { %p269_p11 = por %p268_p10, %p267_p9 }
  0x1d   :  { %p270_p12 = pnand %p269_p11, %p263_p8 }
  0xec   :  { %v168_v3 = vpop.f32.mrb[0].mxu1  ;;  %v95_v4 = vpop.f32.mrb[0].mxu0 }
  0xed   :  { %v176_v5 = vrot.slane %v168_v3, 7  ;;  %v230_v6 = vpop.f32.mrb[1].mxu1  ;;  %v225_v7 = vpop.f32.mrb[1].mxu0 }
  0xef   :  { %v192_v8 = vsel %vm191_vm3, %v176_v5, %v95_v4  ;;  %v178_v9 = vsel %vm177_vm4, %v176_v5, %v95_v4  ;;  %v185_v10 = vsel %vm184_vm5, %v176_v5, %v95_v4 }
  0xf0   :  { %193 = vrot.lane.b32.xlu1 %v192_v8, %s293_s0  ;;  %179 = vrot.lane.b32.xlu0 %v178_v9, %s294_s20 }
  0xf4   :  { %186 = vrot.lane.b32.xlu0 %v185_v10, %s295_s21 }
 0x162   :  { %v180_v11 = vpop.permute.xlu0 %179  ;;  %v194_v13 = vpop.permute.xlu1 %193 }
 0x163   :  { %183 = vst.msk [vmem:[#allocation5] sm:$0x3] %vm182_vm6, %v180_v11 }
 0x166   :  { %v187_v12 = vpop.permute.xlu0 %186 }
 0x167   :  { %190 = vst.msk [vmem:[#allocation5 - $0x1] sm:$0x6] %vm189_vm7, %v187_v12 }
 0x168   :  { %197 = vst.msk [vmem:[#allocation5 - $0x2] sm:$0xc] %vm196_vm8, %v194_v13 }
 0x169   :  { %273 = shalt.err (!%p270_p12)
}
 0x16a   :  { %s274_s27 = scalar_lea.hbm %s332_s1, 32 }
 0x16b   :  { %p275_p13 = scmp.ne.s32.totalorder %s332_s1, %s274_s27  ;;  %p278_p0 = scmp.lt.u32.totalorder %s274_s27, %s332_s1 }
 0x16d   :  { %p280_p1 = pnand %p278_p0, %p275_p13 }
 0x16f   :  { %283 = shalt.err (!%p280_p1)
}
 0x170   :  { %207 = dma.vmem_to_hbm [thread:$0]  %s205_s23, 32, %s332_s1, [#allocation4]  }
 0x171   :  { %286 = dma.done.wait [#allocation4], 32  }
 0x172   :  { %287 = vsyncadd [#allocation4], 4294967264 }
 0x173   :  { %211 = vsyncpa [#allocation3], 1 }
 0x174   :  { %212 = vsyncpa [#allocation4], 1 }

</bundles_post_ra>
